<compile_context>
chip_gen: v7x
topology: tpu7x:2x2x1
jax: 0.10.0
libtpu: 0.0.40
codegen_flags: <defaults>
</compile_context>

<pallas_src>
import functools
import math

import jax
import jax.numpy as jnp
from jax import lax
from jax.experimental import pallas as pl
from jax.experimental.pallas import tpu as pltpu


def _round_up(x, m):
    return (x + m - 1) // m * m


def _softplus(x):
    # torch.nn.Softplus (beta=1, threshold=20): x if x > 20 else log1p(exp(x))
    return jnp.where(x > 20.0, x, jnp.log1p(jnp.exp(jnp.minimum(x, 20.0))))


def _var_emb_kernel(mu_ref, var_ref, eps_ref,          # VMEM (TM, D) f32
                    w1_ref, w2_ref,                    # VMEM (D, D) matmul dtype, (out, in)
                    h_ref, kl_ref,                     # VMEM (TM, D) f32, (1, 128) f32
                    *, n_valid):
    mu = mu_ref[...]                                   # f32 elementwise math throughout
    eps = eps_ref[...]

    sp = _softplus(var_ref[...])                       # softplus(var_embedding)
    log_sp = jnp.log(sp)                               # log_variance (single log per element)
    std = jnp.sqrt(sp)                                 # exp(0.5*log(sp)) == sqrt(sp)
    h = mu + eps * std                                 # reparameterize (training path)

    # non_linear_mlp: Linear(D,D,bias=False) -> ReLU -> Linear(D,D,bias=False)
    # Weights are (out, in); contract over their axis 1 (no pre-transpose).
    cdims = (((1,), (1,)), ((), ()))
    h1 = jnp.maximum(
        lax.dot_general(h.astype(w1_ref.dtype), w1_ref[...], cdims,
                        preferred_element_type=jnp.float32), 0.0)
    h2 = lax.dot_general(h1.astype(w2_ref.dtype), w2_ref[...], cdims,
                         preferred_element_type=jnp.float32)
    h_ref[...] = h2.astype(h_ref.dtype)

    # KL(q || N(0,1)) partial for this tile, with padded rows masked out.
    tm = mu.shape[0]
    row = pl.program_id(0) * tm + lax.broadcasted_iota(jnp.int32, (tm, 1), 0)
    kl_row = 0.5 * jnp.sum(-1.0 + sp + mu * mu - log_sp, axis=1, keepdims=True)
    kl_row = jnp.where(row < n_valid, kl_row, 0.0)
    kl_ref[...] = jnp.broadcast_to(jnp.sum(kl_row), kl_ref.shape)


def variational_embedding_forward(topic_ids, mu_table, var_table, w1, w2, eps,
                                  *, tile_m=256, matmul_dtype=jnp.bfloat16):
    """topic_ids: int of any shape; tables: (topic_num, D); w1/w2: (D, D) torch-Linear
    weights in (out, in) layout; eps: randn of shape topic_ids.shape + (D,)."""
    ids_flat = topic_ids.reshape(-1).astype(jnp.int32)
    N = ids_flat.shape[0]
    topic_num, D = mu_table.shape

    # Pre-gather the tiny tables (replaces per-row DMAs; unlocks row batching).
    mu_g = mu_table.astype(jnp.float32)[ids_flat]              # (N, D)
    var_g = var_table.astype(jnp.float32)[ids_flat]            # (N, D)
    eps_flat = eps.reshape(N, D).astype(jnp.float32)

    # Row-tile: multiple of 8 sublanes, capped at tile_m (128/256 both MXU-friendly).
    tm = min(tile_m, _round_up(N, 8))
    n_pad = _round_up(N, tm)
    if n_pad != N:
        pad = ((0, n_pad - N), (0, 0))
        mu_g = jnp.pad(mu_g, pad)
        var_g = jnp.pad(var_g, pad)
        eps_flat = jnp.pad(eps_flat, pad)
    num_tiles = n_pad // tm

    # bf16 matmul inputs, f32 accumulate (keep (out, in) layout; no transpose copy).
    # NOTE: in a real model, do this cast once at parameter-init time.
    w1m = w1.astype(matmul_dtype)
    w2m = w2.astype(matmul_dtype)

    kernel = functools.partial(_var_emb_kernel, n_valid=N)

    grid_spec = pltpu.PrefetchScalarGridSpec(
        num_scalar_prefetch=0,
        grid=(num_tiles,),
        in_specs=[
            pl.BlockSpec((tm, D), lambda i: (i, 0)),   # gathered mu rows
            pl.BlockSpec((tm, D), lambda i: (i, 0)),   # gathered var rows
            pl.BlockSpec((tm, D), lambda i: (i, 0)),   # epsilon rows
            # Resident weights (constant index_map => no re-DMA across steps).
            # TODO(synk): for very large D on v7x (64 MiB VMEM) add
            # pipeline_mode=pl.Buffered(1) / raise vmem_limit_bytes.
            pl.BlockSpec((D, D), lambda i: (0, 0)),
            pl.BlockSpec((D, D), lambda i: (0, 0)),
        ],
        out_specs=[
            pl.BlockSpec((tm, D), lambda i: (i, 0)),   # h rows (lane-dense, D mult of 128)
            pl.BlockSpec((1, 128), lambda i: (i, 0)),  # per-tile KL partial (lane-dense)
        ],
    )

    h_pad, kl_parts = pl.pallas_call(
        kernel,
        out_shape=(
            jax.ShapeDtypeStruct((n_pad, D), jnp.float32),
            jax.ShapeDtypeStruct((num_tiles, 128), jnp.float32),
        ),
        grid_spec=grid_spec,
        compiler_params=pltpu.CompilerParams(
            dimension_semantics=("parallel",)),        # no shared accumulator -> megacore OK
    )(mu_g, var_g, eps_flat, w1m, w2m)

    h = h_pad[:N].reshape(topic_ids.shape + (D,))
    prior_loss = jnp.sum(kl_parts[:, 0])
    return h, prior_loss


def _reference(topic_ids, mu_table, var_table, w1, w2, eps, matmul_dtype=jnp.bfloat16):
    """Pure-JAX reference with the same bf16-matmul / f32-accumulate policy."""
    D = mu_table.shape[1]
    mu = mu_table[topic_ids]
    sp = jax.nn.softplus(var_table[topic_ids])
    log_var = jnp.log(sp)
    std = jnp.exp(0.5 * log_var)
    h = mu + eps * std
    hf = h.reshape(-1, D).astype(matmul_dtype)
    h1 = jnp.maximum(
        jnp.dot(hf, w1.astype(matmul_dtype).T, preferred_element_type=jnp.float32), 0.0)
    h2 = jnp.dot(h1.astype(matmul_dtype), w2.astype(matmul_dtype).T,
                 preferred_element_type=jnp.float32)
    kl = 0.5 * jnp.sum(-1.0 + jnp.exp(log_var) + mu ** 2 - log_var)
    return h2.reshape(topic_ids.shape + (D,)), kl


if __name__ == "__main__":
    topic_num = 16
    D = 128           # topic_embedding_dim (lane-friendly)
    B, T = 2, 8       # topic_ids shape (2, 8) -> N = 16 -> single grid step

    key = jax.random.PRNGKey(0)
    k_mu, k_var, k_w1, k_w2, k_ids, k_eps = jax.random.split(key, 6)

    # kaiming_normal_ on (topic_num, D): std = sqrt(2 / fan_in) = sqrt(2 / D)
    mu_table = jax.random.normal(k_mu, (topic_num, D), jnp.float32) * math.sqrt(2.0 / D)
    var_table = jax.random.normal(k_var, (topic_num, D), jnp.float32) * math.sqrt(2.0 / D)
    # mlp[0]: kaiming_normal_, mlp[-1]: normal(0, 1)  (non_linear_mlp=True)
    w1 = jax.random.normal(k_w1, (D, D), jnp.float32) * math.sqrt(2.0 / D)
    w2 = jax.random.normal(k_w2, (D, D), jnp.float32)

    topic_ids = jax.random.randint(k_ids, (B, T), 0, topic_num, jnp.int32)
    eps = jax.random.normal(k_eps, (B, T, D), jnp.float32)  # torch.randn equivalent
    # TODO(synk): eval-mode truncated_normal (scipy.stats.truncnorm) path not implemented;
    # training-mode (standard normal) reparameterization is reproduced.
    # TODO(synk): eps could be generated in-kernel (pltpu.prng_seed + stateful_normal) to
    # drop the (N, D) HBM stream; kept as an input here so results match the reference RNG.

    h, prior_loss = variational_embedding_forward(
        topic_ids, mu_table, var_table, w1, w2, eps)
    jax.block_until_ready((h, prior_loss))

    h_ref, kl_ref = _reference(topic_ids, mu_table, var_table, w1, w2, eps)
    assert h.shape == (B, T, D)
    assert jnp.allclose(h, h_ref, atol=1e-2, rtol=1e-2), "h mismatch"
    assert jnp.allclose(prior_loss, kl_ref, atol=1e-2, rtol=1e-3), "prior_loss mismatch"

    print("KERNEL_OK")
</pallas_src>

<mosaic_0001>
module attributes {stable_mosaic.version = 11 : i64} {
  func.func @_var_emb_kernel(%arg0: i32, %arg1: memref<16x128xf32, #tpu.memory_space<vmem>>, %arg2: memref<16x128xf32, #tpu.memory_space<vmem>>, %arg3: memref<16x128xf32, #tpu.memory_space<vmem>>, %arg4: memref<128x128xbf16, #tpu.memory_space<vmem>>, %arg5: memref<128x128xbf16, #tpu.memory_space<vmem>>, %arg6: memref<16x128xf32, #tpu.memory_space<vmem>>, %arg7: memref<1x128xf32, #tpu.memory_space<vmem>>) attributes {dimension_semantics = [#tpu.dimension_semantics<parallel>], iteration_bounds = array<i64: 1>, scalar_prefetch = 0 : i64, scratch_operands = 0 : i64, tpu.core_type = #tpu.core_type<tc>, window_params = [{transform_indices = @transform_0, window_bounds = array<i64: 16, 128>}, {transform_indices = @transform_1, window_bounds = array<i64: 16, 128>}, {transform_indices = @transform_2, window_bounds = array<i64: 16, 128>}, {pipeline_mode = #tpu.pipeline_mode<synchronous>, transform_indices = @transform_3, window_bounds = array<i64: 128, 128>}, {pipeline_mode = #tpu.pipeline_mode<synchronous>, transform_indices = @transform_4, window_bounds = array<i64: 128, 128>}, {transform_indices = @transform_5, window_bounds = array<i64: 16, 128>}, {transform_indices = @transform_6, window_bounds = array<i64: 1, 128>}]} {
    %c0 = arith.constant 0 : index
    %c0_0 = arith.constant 0 : index
    %0 = vector.load %arg1[%c0, %c0_0] : memref<16x128xf32, #tpu.memory_space<vmem>>, vector<16x128xf32>
    %c0_1 = arith.constant 0 : index
    %c0_2 = arith.constant 0 : index
    %1 = vector.load %arg3[%c0_1, %c0_2] : memref<16x128xf32, #tpu.memory_space<vmem>>, vector<16x128xf32>
    %c0_3 = arith.constant 0 : index
    %c0_4 = arith.constant 0 : index
    %2 = vector.load %arg2[%c0_3, %c0_4] : memref<16x128xf32, #tpu.memory_space<vmem>>, vector<16x128xf32>
    %cst = arith.constant 2.000000e+01 : f32
    %3 = vector.broadcast %cst : f32 to vector<16x128xf32>
    %4 = arith.cmpf ogt, %2, %3 : vector<16x128xf32>
    %cst_5 = arith.constant 2.000000e+01 : f32
    %5 = vector.broadcast %cst_5 : f32 to vector<16x128xf32>
    %6 = arith.minimumf %2, %5 : vector<16x128xf32>
    %7 = math.exp %6 : vector<16x128xf32>
    %8 = math.log1p %7 : vector<16x128xf32>
    %9 = arith.select %4, %2, %8 : vector<16x128xi1>, vector<16x128xf32>
    %10 = math.log %9 : vector<16x128xf32>
    %11 = math.sqrt %9 : vector<16x128xf32>
    %12 = arith.mulf %1, %11 : vector<16x128xf32>
    %13 = arith.addf %0, %12 : vector<16x128xf32>
    %14 = arith.truncf %13 : vector<16x128xf32> to vector<16x128xbf16>
    %c0_6 = arith.constant 0 : index
    %c0_7 = arith.constant 0 : index
    %15 = vector.load %arg4[%c0_6, %c0_7] : memref<128x128xbf16, #tpu.memory_space<vmem>>, vector<128x128xbf16>
    %cst_8 = arith.constant dense<0.000000e+00> : vector<16x128xf32>
    %16 = tpu.matmul %14, %15, %cst_8 {dimension_numbers = #tpu.dot_dimension_numbers<[1], [1], [0], [0], [0, 0, 1, 0], [], []>} : vector<16x128xbf16>, vector<128x128xbf16>, vector<16x128xf32> -> vector<16x128xf32>
    %cst_9 = arith.constant 0.000000e+00 : f32
    %17 = vector.broadcast %cst_9 : f32 to vector<16x128xf32>
    %18 = arith.maximumf %16, %17 : vector<16x128xf32>
    %19 = arith.truncf %18 : vector<16x128xf32> to vector<16x128xbf16>
    %c0_10 = arith.constant 0 : index
    %c0_11 = arith.constant 0 : index
    %20 = vector.load %arg5[%c0_10, %c0_11] : memref<128x128xbf16, #tpu.memory_space<vmem>>, vector<128x128xbf16>
    %cst_12 = arith.constant dense<0.000000e+00> : vector<16x128xf32>
    %21 = tpu.matmul %19, %20, %cst_12 {dimension_numbers = #tpu.dot_dimension_numbers<[1], [1], [0], [0], [0, 0, 1, 0], [], []>} : vector<16x128xbf16>, vector<128x128xbf16>, vector<16x128xf32> -> vector<16x128xf32>
    %c0_13 = arith.constant 0 : index
    %c0_14 = arith.constant 0 : index
    %22 = vector.load %arg6[%c0_13, %c0_14] : memref<16x128xf32, #tpu.memory_space<vmem>>, vector<16x128xf32>
    tpu.vector_store %arg6[%c0_13, %c0_14], %21 {strides = array<i32>} : memref<16x128xf32, #tpu.memory_space<vmem>>, vector<16x128xf32>,
    %c16_i32 = arith.constant 16 : i32
    %23 = arith.muli %arg0, %c16_i32 : i32
    %24 = tpu.iota {dimensions = array<i32: 0>} : vector<16x1xi32>
    %25 = vector.broadcast %23 : i32 to vector<16x1xi32>
    %26 = arith.addi %25, %24 : vector<16x1xi32>
    %cst_15 = arith.constant -1.000000e+00 : f32
    %27 = vector.broadcast %cst_15 : f32 to vector<16x128xf32>
    %28 = arith.addf %27, %9 : vector<16x128xf32>
    %29 = arith.mulf %0, %0 : vector<16x128xf32>
    %30 = arith.addf %28, %29 : vector<16x128xf32>
    %31 = arith.subf %30, %10 : vector<16x128xf32>
    %cst_16 = arith.constant dense<0.000000e+00> : vector<16xf32>
    %32 = vector.multi_reduction <add>, %31, %cst_16 [1] : vector<16x128xf32> to vector<16xf32>
    %33 = vector.shape_cast %32 : vector<16xf32> to vector<16x1xf32>
    %cst_17 = arith.constant 5.000000e-01 : f32
    %34 = vector.broadcast %cst_17 : f32 to vector<16x1xf32>
    %35 = arith.mulf %34, %33 : vector<16x1xf32>
    %c16_i32_18 = arith.constant 16 : i32
    %36 = vector.broadcast %c16_i32_18 : i32 to vector<16x1xi32>
    %37 = arith.cmpi slt, %26, %36 : vector<16x1xi32>
    %cst_19 = arith.constant 0.000000e+00 : f32
    %38 = vector.broadcast %cst_19 : f32 to vector<16x1xf32>
    %39 = arith.select %37, %35, %38 : vector<16x1xi1>, vector<16x1xf32>
    %40 = vector.shape_cast %39 : vector<16x1xf32> to vector<1x16x1xf32>
    %cst_20 = arith.constant dense<0.000000e+00> : vector<1xf32>
    %41 = vector.multi_reduction <add>, %40, %cst_20 [1, 2] : vector<1x16x1xf32> to vector<1xf32>
    %42 = vector.shape_cast %41 : vector<1xf32> to vector<1x1x1xf32>
    %43 = vector.extract %42[0, 0, 0] : f32 from vector<1x1x1xf32>
    %44 = vector.broadcast %43 : f32 to vector<1x128xf32>
    %c0_21 = arith.constant 0 : index
    %c0_22 = arith.constant 0 : index
    %45 = vector.load %arg7[%c0_21, %c0_22] : memref<1x128xf32, #tpu.memory_space<vmem>>, vector<1x128xf32>
    tpu.vector_store %arg7[%c0_21, %c0_22], %44 {strides = array<i32>} : memref<1x128xf32, #tpu.memory_space<vmem>>, vector<1x128xf32>,
    return
  }
  func.func @transform_0(%arg0: i32) -> (i32, i32) {
    %c0_i32 = arith.constant 0 : i32
    %c0_i32_0 = arith.constant 0 : i32
    return %arg0, %c0_i32 : i32, i32
  }
  func.func @transform_1(%arg0: i32) -> (i32, i32) {
    %c0_i32 = arith.constant 0 : i32
    %c0_i32_0 = arith.constant 0 : i32
    return %arg0, %c0_i32 : i32, i32
  }
  func.func @transform_2(%arg0: i32) -> (i32, i32) {
    %c0_i32 = arith.constant 0 : i32
    %c0_i32_0 = arith.constant 0 : i32
    return %arg0, %c0_i32 : i32, i32
  }
  func.func @transform_3(%arg0: i32) -> (i32, i32) {
    %c0_i32 = arith.constant 0 : i32
    %c0_i32_0 = arith.constant 0 : i32
    %c0_i32_1 = arith.constant 0 : i32
    return %c0_i32, %c0_i32_0 : i32, i32
  }
  func.func @transform_4(%arg0: i32) -> (i32, i32) {
    %c0_i32 = arith.constant 0 : i32
    %c0_i32_0 = arith.constant 0 : i32
    %c0_i32_1 = arith.constant 0 : i32
    return %c0_i32, %c0_i32_0 : i32, i32
  }
  func.func @transform_5(%arg0: i32) -> (i32, i32) {
    %c0_i32 = arith.constant 0 : i32
    %c0_i32_0 = arith.constant 0 : i32
    return %arg0, %c0_i32 : i32, i32
  }
  func.func @transform_6(%arg0: i32) -> (i32, i32) {
    %c0_i32 = arith.constant 0 : i32
    %c0_i32_0 = arith.constant 0 : i32
    return %arg0, %c0_i32 : i32, i32
  }
}

</mosaic_0001>

<bundles_post_ra>
// kernel: tpu_custom_call.1
= control target key start
LH: loop header
LB: loop body
LE: loop exit
PB: predicated region body
PF: predicated region fallthrough
CT: control target
= control target key end

     0   :  { %12 = vsyncpa [#allocation3], 0  ;;  %s908_s0 = inlined_call_operand.hbm [shape: f32[16,128], index: 0, kind: input, shape index: {}]   ;;  %s909_s1 = inlined_call_operand.hbm [shape: f32[16,128], index: 1, kind: input, shape index: {}]   ;;  %s910_s2 = inlined_call_operand.hbm [shape: f32[16,128], index: 2, kind: input, shape index: {}]   ;;  %s911_s3 = inlined_call_operand.hbm [shape: bf16[128,128], index: 3, kind: input, shape index: {}]   ;;  %s912_s4 = inlined_call_operand.hbm [shape: bf16[128,128], index: 4, kind: input, shape index: {}]   ;;  %s913_s5 = inlined_call_operand.hbm [shape: f32[16,128], index: 5, kind: output, shape index: {0}]   ;;  %s914_s6 = inlined_call_operand.hbm [shape: f32[1,128], index: 6, kind: output, shape index: {1}]  }
   0x1   :  { %13 = vsyncpa [#allocation6], 0 }
   0x2   :  { %14 = vsyncpa [#allocation9], 0 }
   0x3   :  { %15 = vsyncpa [#allocation4], 0 }
   0x4   :  { %16 = vsyncpa [#allocation13], 0  ;;  %s723_s21 = smov [#allocation5]   ;;  %s724_s23 = smov [#allocation8]  }
   0x5   :  { %s34_s22 = sshll.u32 %s723_s21, 4  ;;  %s58_s24 = sshll.u32 %s724_s23, 4  ;;  %s35_s22 = int_to_ptr.vmem [resolvable:$true] %s34_s22  ;;  %s771_s24 = int_to_ptr.vmem [resolvable:$true] %s58_s24 }
   0x6   :  { %s559_s27 = scalar_lea.hbm %s909_s1, 256 }
   0x7   :  { %p560_p0 = scmp.ne.s32.totalorder %s909_s1, %s559_s27  ;;  %p563_p1 = scmp.lt.u32.totalorder %s559_s27, %s909_s1 }
   0x9   :  { %p565_p2 = pnand %p563_p1, %p560_p0 }
   0xb   :  { %568 = shalt.err (!%p565_p2)
}
   0xc   :  { %s569_s8 = scalar_lea.vmem %s35_s22, 256  ;;  %p574_p4 = scmp.lt.s32.totalorder %s35_s22, %s35_s22 }
   0xd   :  { %p570_p3 = scmp.ne.s32.totalorder %s35_s22, %s569_s8  ;;  %p575_p5 = scmp.lt.s32.totalorder %s569_s8, %s569_s8 }
   0xf   :  { %p576_p6 = por %p575_p5, %p574_p4 }
  0x11   :  { %p577_p7 = pnand %p576_p6, %p570_p3 }
  0x13   :  { %580 = shalt.err (!%p577_p7)
}
  0x14   :  { %s725_s9 = smov 128   ;;  %s726_s10 = smov 8  }
  0x15   :  { %40 = dma.hbm_to_vmem [thread:$0]  %s909_s1, 256, %s35_s22, [#allocation6], %s725_s9, %s725_s9, %s726_s10  }
  0x16   :  { %s581_s15 = scalar_lea.hbm %s911_s3, 1024 }
  0x17   :  { %p582_p8 = scmp.ne.s32.totalorder %s911_s3, %s581_s15  ;;  %p585_p9 = scmp.lt.u32.totalorder %s581_s15, %s911_s3 }
  0x19   :  { %p587_p10 = pnand %p585_p9, %p582_p8 }
  0x1b   :  { %590 = shalt.err (!%p587_p10)
}
  0x1c   :  { %s591_s20 = scalar_lea.vmem %s771_s24, 1024  ;;  %p596_p12 = scmp.lt.s32.totalorder %s771_s24, %s771_s24 }
  0x1d   :  { %p592_p11 = scmp.ne.s32.totalorder %s771_s24, %s591_s20  ;;  %p597_p13 = scmp.lt.s32.totalorder %s591_s20, %s591_s20 }
  0x1f   :  { %p598_p0 = por %p597_p13, %p596_p12 }
  0x21   :  { %p599_p1 = pnand %p598_p0, %p592_p11 }
  0x23   :  { %602 = shalt.err (!%p599_p1)
}
  0x24   :  { %s727_s1 = smov 64   ;;  %s728_s21 = smov 4  }
  0x25   :  { %64 = dma.hbm_to_vmem [thread:$0]  %s911_s3, 1024, %s771_s24, [#allocation9], %s727_s1, %s727_s1, %s728_s21  }
  0x26   :  { %s729_s25 = smov [#allocation2]   ;;  %s730_s27 = smov [#allocation7]  }
  0x27   :  { %s22_s26 = sshll.u32 %s729_s25, 4  ;;  %s46_s28 = sshll.u32 %s730_s27, 4  ;;  %s23_s26 = int_to_ptr.vmem [resolvable:$true] %s22_s26  ;;  %s808_s28 = int_to_ptr.vmem [resolvable:$true] %s46_s28 }
  0x28   :  { %s603_s7 = scalar_lea.hbm %s908_s0, 256 }
  0x29   :  { %p604_p2 = scmp.ne.s32.totalorder %s908_s0, %s603_s7  ;;  %p607_p3 = scmp.lt.u32.totalorder %s603_s7, %s908_s0 }
  0x2b   :  { %p609_p4 = pnand %p607_p3, %p604_p2 }
  0x2d   :  { %612 = shalt.err (!%p609_p4)
}
  0x2e   :  { %s613_s3 = scalar_lea.vmem %s23_s26, 256  ;;  %p618_p6 = scmp.lt.s32.totalorder %s23_s26, %s23_s26 }
  0x2f   :  { %p614_p5 = scmp.ne.s32.totalorder %s23_s26, %s613_s3  ;;  %p619_p7 = scmp.lt.s32.totalorder %s613_s3, %s613_s3 }
  0x31   :  { %p620_p8 = por %p619_p7, %p618_p6 }
  0x33   :  { %p621_p9 = pnand %p620_p8, %p614_p5 }
  0x35   :  { %624 = shalt.err (!%p621_p9)
}
  0x36   :  { %28 = dma.hbm_to_vmem [thread:$0]  %s908_s0, 256, %s23_s26, [#allocation3], %s725_s9, %s725_s9, %s726_s10  }
  0x37   :  { %s625_s17 = scalar_lea.hbm %s910_s2, 256 }
  0x38   :  { %p626_p10 = scmp.ne.s32.totalorder %s910_s2, %s625_s17  ;;  %p629_p11 = scmp.lt.u32.totalorder %s625_s17, %s910_s2 }
  0x3a   :  { %p631_p12 = pnand %p629_p11, %p626_p10 }
  0x3c   :  { %634 = shalt.err (!%p631_p12)
}
  0x3d   :  { %s635_s23 = scalar_lea.vmem %s808_s28, 256  ;;  %p640_p0 = scmp.lt.s32.totalorder %s808_s28, %s808_s28 }
  0x3e   :  { %p636_p13 = scmp.ne.s32.totalorder %s808_s28, %s635_s23  ;;  %p641_p1 = scmp.lt.s32.totalorder %s635_s23, %s635_s23 }
  0x40   :  { %p642_p2 = por %p641_p1, %p640_p0 }
  0x42   :  { %p643_p3 = pnand %p642_p2, %p636_p13 }
  0x44   :  { %646 = shalt.err (!%p643_p3)
}
  0x45   :  { %52 = dma.hbm_to_vmem [thread:$0]  %s910_s2, 256, %s808_s28, [#allocation6], %s725_s9, %s725_s9, %s726_s10  }
  0x46   :  { %s731_s26 = smov [#allocation10]   ;;  %s647_s7 = scalar_lea.hbm %s912_s4, 1024 }
  0x47   :  { %s70_s27 = sshll.u32 %s731_s26, 4  ;;  %p648_p4 = scmp.ne.s32.totalorder %s912_s4, %s647_s7  ;;  %s71_s27 = int_to_ptr.vmem [resolvable:$true] %s70_s27 }
  0x48   :  { %p651_p5 = scmp.lt.u32.totalorder %s647_s7, %s912_s4 }
  0x4a   :  { %p653_p6 = pnand %p651_p5, %p648_p4 }
  0x4c   :  { %656 = shalt.err (!%p653_p6)
}
  0x4d   :  { %s657_s3 = scalar_lea.vmem %s71_s27, 1024  ;;  %p662_p8 = scmp.lt.s32.totalorder %s71_s27, %s71_s27 }
  0x4e   :  { %p658_p7 = scmp.ne.s32.totalorder %s71_s27, %s657_s3  ;;  %p663_p9 = scmp.lt.s32.totalorder %s657_s3, %s657_s3 }
  0x50   :  { %p664_p10 = por %p663_p9, %p662_p8 }
  0x52   :  { %p665_p11 = pnand %p664_p10, %p658_p7 }
  0x54   :  { %668 = shalt.err (!%p665_p11)
}
  0x55   :  { %76 = dma.hbm_to_vmem [thread:$0]  %s912_s4, 1024, %s71_s27, [#allocation9], %s727_s1, %s727_s1, %s728_s21  }
  0x56   :  { %713 = dma.done.wait [#allocation3], 256  }
  0x57   :  { %714 = vsyncadd [#allocation3], 4294967040 }
  0x58   :  { %715 = dma.done.wait [#allocation6], 512  }
  0x59   :  { %716 = vsyncadd [#allocation6], 4294966784 }
  0x5a   :  { %717 = dma.done.wait [#allocation9], 2048  }
  0x5b   :  { %718 = vsyncadd [#allocation9], 4294965248  ;;  %v732_v0 = vmov 0.0   ;;  %vm733_vm0 = vmmov 0   ;;  %v527_v1 = vld [vmem:[#allocation8] sm:$0xff]   ;;  %v528_v2 = vld [vmem:[#allocation8 + $0x8] sm:$0xff]  }
  0x5c   :  { %472 = vmatprep.subr.bf16.mxu0 %v732_v0  ;;  %488 = vmatprep.mubr.msk.bf16.mxu0 %vm733_vm0, %v732_v0  ;;  %v97_v3 = vld [vmem:[#allocation5] sm:$0xff]  ;;  %v98_v4 = vld [vmem:[#allocation5 + $0x8] sm:$0xff]  ;;  %v529_v10 = vld [vmem:[#allocation8 + $0x10] sm:$0xff]   ;;  %vm390_vm9 = vcmask 7168   ;;  %s734_s4 = smov [#allocation12]  }
  0x5d   :  { %492 = vmatprep.subr.bf16.mxu1 %v732_v0  ;;  %508 = vmatprep.mubr.msk.bf16.mxu1 %vm733_vm0, %v732_v0  ;;  %v101_v5 = vmin.f32 %v97_v3, 20.0  ;;  %v102_v6 = vmin.f32 %v98_v4, 20.0  ;;  %v535_v7 = vld [vmem:[#allocation10] sm:$0xff]   ;;  %v536_v11 = vld [vmem:[#allocation10 + $0x8] sm:$0xff]   ;;  %v530_v12 = vld [vmem:[#allocation8 + $0x18] sm:$0xff]   ;;  %vm99_vm2 = vcmp.gt.f32.partialorder %v97_v3, 20.0 }
  0x5e   :  { %473 = vmatpush3.bf16.xpose.msra.mxu0 %v527_v1  ;;  %493 = vmatpush3.bf16.xpose.msra.mxu1 %v535_v7  ;;  %v537_v16 = vld [vmem:[#allocation10 + $0x10] sm:$0xff]   ;;  %v531_v20 = vld [vmem:[#allocation8 + $0x20] sm:$0xff]   ;;  %v538_v24 = vld [vmem:[#allocation10 + $0x18] sm:$0xff]   ;;  %vm100_vm4 = vcmp.gt.f32.partialorder %v98_v4, 20.0  ;;  %s423_s1 = sshll.u32 %s734_s4, 4  ;;  %s424_s1 = int_to_ptr.vmem [resolvable:$true] %s423_s1 }
  0x5f   :  { %474 = vmatprep.subr.bf16.mxu0 %v732_v0  ;;  %v103_v8 = vmul.f32 1.442695, %v101_v5  ;;  %v105_v9 = vmul.f32 1.442695, %v102_v6  ;;  %494 = vmatprep.subr.bf16.mxu1 %v732_v0  ;;  %v532_v30 = vld [vmem:[#allocation8 + $0x28] sm:$0xff]   ;;  %v539_v36 = vld [vmem:[#allocation10 + $0x20] sm:$0xff]   ;;  %p674_p13 = scmp.lt.s32.totalorder %s424_s1, %s424_s1 }
  0x60   :  { %v533_v38 = vld [vmem:[#allocation8 + $0x30] sm:$0xff]   ;;  %v540_v42 = vld [vmem:[#allocation10 + $0x28] sm:$0xff]   ;;  %v94_v43 = vld [vmem:[#allocation2 + $0x8] sm:$0xff]  ;;  %s669_s24 = scalar_lea.vmem %s424_s1, 16  ;;  %s673_s14 = scalar_lea.vmem %s424_s1, 32 }
  0x61   :  { %543 = vpow2.f32 %v103_v8  ;;  %v93_v39 = vld [vmem:[#allocation2] sm:$0xff]  ;;  %v375_v45 = vmul.f32 %v94_v43, %v94_v43  ;;  %v534_v53 = vld [vmem:[#allocation8 + $0x38] sm:$0xff]   ;;  %p670_p12 = scmp.ne.s32.totalorder %s424_s1, %s669_s24  ;;  %p675_p0 = scmp.lt.s32.totalorder %s673_s14, %s669_s24 }
  0x62   :  { %545 = vpow2.f32 %v105_v9  ;;  %v374_v41 = vmul.f32 %v93_v39, %v93_v39  ;;  %v95_v54 = vld [vmem:[#allocation7] sm:$0xff]  ;;  %v96_v57 = vld [vmem:[#allocation7 + $0x8] sm:$0xff] }
  0x63   :  { %p676_p1 = por %p675_p0, %p674_p13 }
  0x65   :  { %p677_p2 = pnand %p676_p1, %p670_p12 }
  0x66   :  { %475 = vmatpush3.bf16.xpose.msra.mxu0 %v528_v2  ;;  %495 = vmatpush3.bf16.xpose.msra.mxu1 %v536_v11 }
  0x67   :  { %476 = vmatprep.subr.bf16.mxu0 %v732_v0  ;;  %496 = vmatprep.subr.bf16.mxu1 %v732_v0 }
  0x6b   :  { %v544_v13 = vpop.eup %543 }
  0x6c   :  { %v546_v14 = vpop.eup %545  ;;  %v107_v15 = vadd.f32 1.0, %v544_v13  ;;  %v110_v18 = vmul.f32 -0.5, %v544_v13  ;;  %v113_v22 = vand.u32 2147483647, %v544_v13 }
  0x6d   :  { %v116_v17 = vadd.f32 1.0, %v546_v14  ;;  %v119_v19 = vmul.f32 -0.5, %v546_v14  ;;  %v122_v25 = vand.u32 2147483647, %v546_v14 }
  0x6e   :  { %477 = vmatpush3.bf16.xpose.msra.mxu0 %v529_v10  ;;  %547 = vlog2.f32 %v107_v15  ;;  %497 = vmatpush3.bf16.xpose.msra.mxu1 %v537_v16  ;;  %v111_v21 = vadd.f32 1.0, %v110_v18  ;;  %vm114_vm1 = vcmp.lt.f32.partialorder %v113_v22, 0.0004427343  ;;  %v542_v10 = vld [vmem:[#allocation10 + $0x38] sm:$0xff]  }
  0x6f   :  { %478 = vmatprep.subr.bf16.mxu0 %v732_v0  ;;  %549 = vlog2.f32 %v116_v17  ;;  %498 = vmatprep.subr.bf16.mxu1 %v732_v0  ;;  %v120_v23 = vadd.f32 1.0, %v119_v19  ;;  %vm123_vm3 = vcmp.lt.f32.partialorder %v122_v25, 0.0004427343 }
  0x70   :  { %v112_v26 = vmul.f32 %v544_v13, %v111_v21 }
  0x71   :  { %v121_v28 = vmul.f32 %v546_v14, %v120_v23 }
  0x76   :  { %479 = vmatpush3.bf16.xpose.msra.mxu0 %v530_v12  ;;  %499 = vmatpush3.bf16.xpose.msra.mxu1 %v538_v24 }
  0x77   :  { %480 = vmatprep.subr.bf16.mxu0 %v732_v0  ;;  %500 = vmatprep.subr.bf16.mxu1 %v732_v0 }
  0x78   :  { %v548_v27 = vpop.eup %547 }
  0x79   :  { %v550_v29 = vpop.eup %549  ;;  %v109_v31 = vmul.f32 0.6931472, %v548_v27 }
  0x7a   :  { %v118_v32 = vmul.f32 0.6931472, %v550_v29 }
  0x7b   :  { %v115_v33 = vsel %vm114_vm1, %v112_v26, %v109_v31 }
  0x7c   :  { %v124_v34 = vsel %vm123_vm3, %v121_v28, %v118_v32  ;;  %v125_v35 = vsel %vm99_vm2, %v97_v3, %v115_v33 }
  0x7d   :  { %v126_v37 = vsel %vm100_vm4, %v98_v4, %v124_v34  ;;  %551 = vrsqrt.f32 %v125_v35  ;;  %v372_v40 = vadd.f32 -1.0, %v125_v35  ;;  %vm133_vm5 = vcmp.eq.f32.partialorder %v125_v35, inf  ;;  %v541_v4 = vld [vmem:[#allocation10 + $0x30] sm:$0xff]  }
  0x7e   :  { %481 = vmatpush3.bf16.xpose.msra.mxu0 %v531_v20  ;;  %553 = vrsqrt.f32 %v126_v37  ;;  %501 = vmatpush3.bf16.xpose.msra.mxu1 %v539_v36  ;;  %v373_v44 = vadd.f32 -1.0, %v126_v37  ;;  %vm135_vm6 = vcmp.eq.f32.partialorder %v125_v35, 0.0  ;;  %v136_v47 = vand.u32 2147483648, %v125_v35 }
  0x7f   :  { %482 = vmatprep.subr.bf16.mxu0 %v732_v0  ;;  %555 = vlog2.f32 %v125_v35  ;;  %502 = vmatprep.subr.bf16.mxu1 %v732_v0  ;;  %vm140_vm7 = vcmp.eq.f32.partialorder %v126_v37, inf  ;;  %v143_v50 = vand.u32 2147483648, %v126_v37  ;;  %v376_v51 = vadd.f32 %v374_v41, %v372_v40 }
  0x80   :  { %557 = vlog2.f32 %v126_v37  ;;  %vm142_vm8 = vcmp.eq.f32.partialorder %v126_v37, 0.0  ;;  %v377_v60 = vadd.f32 %v375_v45, %v373_v44 }
  0x86   :  { %483 = vmatpush3.bf16.xpose.msra.mxu0 %v532_v30  ;;  %503 = vmatpush3.bf16.xpose.msra.mxu1 %v540_v42 }
  0x87   :  { %484 = vmatprep.subr.bf16.mxu0 %v732_v0  ;;  %v552_v46 = vpop.eup %551  ;;  %504 = vmatprep.subr.bf16.mxu1 %v732_v0 }
  0x88   :  { %v554_v48 = vpop.eup %553  ;;  %v132_v49 = vmul.f32 %v552_v46, %v125_v35 }
  0x89   :  { %v556_v52 = vpop.eup %555  ;;  %v139_v55 = vmul.f32 %v554_v48, %v126_v37 }
  0x8a   :  { %v558_v56 = vpop.eup %557  ;;  %v134_v58 = vsel %vm133_vm5, %v125_v35, %v132_v49  ;;  %v128_v59 = vmul.f32 0.6931472, %v556_v52 }
  0x8b   :  { %v137_v61 = vsel %vm135_vm6, %v136_v47, %v134_v58  ;;  %v141_v62 = vsel %vm140_vm7, %v126_v37, %v139_v55  ;;  %v130_v63 = vmul.f32 0.6931472, %v558_v56 }
  0x8c   :  { %v144_v1 = vsel %vm142_vm8, %v143_v50, %v141_v62  ;;  %v145_v2 = vmul.f32 %v137_v61, %v95_v54  ;;  %v378_v3 = vsub.f32 %v376_v51, %v128_v59 }
  0x8d   :  { %v146_v5 = vmul.f32 %v144_v1, %v96_v57  ;;  %v379_v7 = vsub.f32 %v377_v60, %v130_v63 }
  0x8e   :  { %485 = vmatpush3.bf16.xpose.msra.mxu0 %v533_v38  ;;  %v147_v6 = vadd.f32 %v145_v2, %v93_v39  ;;  %380 = vadd.xlane.f32.xlu0 %v378_v3 }
  0x8f   :  { %486 = vmatprep.subr.bf16.mxu0 %v732_v0  ;;  %v148_v8 = vadd.f32 %v146_v5, %v94_v43  ;;  %505 = vmatpush3.bf16.xpose.msra.mxu1 %v541_v4 }
  0x90   :  { %506 = vmatprep.subr.bf16.mxu1 %v732_v0 }
  0x91   :  { %v149_v9 = vpack.c.bf16 %v148_v8, %v147_v6 }
  0x92   :  { %382 = vadd.xlane.f32.xlu0 %v379_v7 }
  0x96   :  { %487 = vmatpush3.bf16.xpose.msra.mxu0 %v534_v53 }
  0x97   :  { %507 = vmatpush3.bf16.xpose.msra.mxu1 %v542_v10 }
  0x9d   :  { %489 = vmatmul.mubr.bf16.vlgmr.msra.gmra.mrb[0].mxu0 %v149_v9 }
 0x11b   :  { %v381_v11 = vpop.xlane.xlu0 %380 }
 0x11c   :  { %v384_v12 = vmul.f32 0.5, %v381_v11 }
 0x11e   :  { %v391_v15 = vsel %vm390_vm9, %v384_v12, 0.0 }
 0x11f   :  { %v383_v13 = vpop.xlane.xlu0 %382 }
 0x120   :  { %v385_v14 = vmul.f32 0.5, %v383_v13 }
 0x122   :  { %v392_v16 = vsel %vm390_vm9, %v385_v14, 0.0 }
 0x123   :  { %v393_v17 = vadd.f32 %v392_v16, %v391_v15 }
 0x125   :  { %394 = vadd.xlane.f32.xlu1 %v393_v17 }
 0x170   :  { %v248_v18 = vpop.f32.mrb[0].mxu0 }
 0x171   :  { %v490_v19 = vpop.f32.mrb[1].mxu0  ;;  %v255_v21 = vmax.f32 %v248_v18, 0.0 }
 0x172   :  { %v251_v20 = vpop.f32.mrb[2].mxu0 }
 0x173   :  { %v256_v22 = vmax.f32 %v251_v20, 0.0  ;;  %v491_v23 = vpop.f32.mrb[3].mxu0 }
 0x175   :  { %v257_v0 = vpack.c.bf16 %v256_v22, %v255_v21 }
 0x177   :  { %509 = vmatmul.mubr.bf16.vlgmr.msra.gmra.mrb[0].mxu1 %v257_v0 }
 0x1b2   :  { %v395_v24 = vpop.xlane.xlu1 %394 }
 0x1b3   :  { %v396_v25 = vrot.slane %v395_v24, 4 }
 0x1b5   :  { %v397_v26 = vadd.f32 %v396_v25, %v395_v24 }
 0x1b7   :  { %v398_v27 = vrot.slane %v397_v26, 2 }
 0x1b9   :  { %v399_v28 = vadd.f32 %v398_v27, %v397_v26 }
 0x1bb   :  { %v400_v29 = vrot.slane %v399_v28, 1 }
 0x1bd   :  { %v401_v30 = vadd.f32 %v400_v29, %v399_v28 }
 0x1bf   :  { %512 = vpush %v401_v30 }
 0x1f0   :  { %s513_s21 = spop %512 }
 0x1f1   :  { %v403_v31 = vstv %s513_s21 }
 0x1f2   :  { %404 = vst [vmem:[#allocation12] sm:$0x1] %v403_v31 }
 0x1f3   :  { %680 = shalt.err (!%p677_p2)
}
 0x1f4   :  { %s681_s17 = scalar_lea.hbm %s914_s6, 16 }
 0x1f5   :  { %p682_p3 = scmp.ne.s32.totalorder %s914_s6, %s681_s17  ;;  %p685_p4 = scmp.lt.u32.totalorder %s681_s17, %s914_s6 }
 0x1f7   :  { %p687_p5 = pnand %p685_p4, %p682_p3 }
 0x1f9   :  { %690 = shalt.err (!%p687_p5)
}
 0x1fa   :  { %426 = dma.vmem_to_hbm [thread:$0]  %s424_s1, 16, %s914_s6, [#allocation13]  }
 0x1fb   :  { %s735_s25 = smov [#allocation11]  }
 0x1fc   :  { %s410_s26 = sshll.u32 %s735_s25, 4  ;;  %s411_s26 = int_to_ptr.vmem [resolvable:$true] %s410_s26 }
 0x1fd   :  { %s691_s27 = scalar_lea.vmem %s411_s26, 256  ;;  %p696_p7 = scmp.lt.s32.totalorder %s411_s26, %s411_s26 }
 0x1fe   :  { %p692_p6 = scmp.ne.s32.totalorder %s411_s26, %s691_s27  ;;  %p697_p8 = scmp.lt.s32.totalorder %s691_s27, %s691_s27 }
 0x200   :  { %p698_p9 = por %p697_p8, %p696_p7 }
 0x202   :  { %p699_p10 = pnand %p698_p9, %p692_p6 }
 0x24a   :  { %v356_v32 = vpop.f32.mrb[0].mxu1 }
 0x24b   :  { %363 = vst [vmem:[#allocation11] sm:$0xff] %v356_v32  ;;  %v510_v33 = vpop.f32.mrb[1].mxu1 }
 0x24c   :  { %v359_v34 = vpop.f32.mrb[2].mxu1 }
 0x24d   :  { %364 = vst [vmem:[#allocation11 + $0x8] sm:$0xff] %v359_v34  ;;  %v511_v35 = vpop.f32.mrb[3].mxu1 }
 0x24e   :  { %702 = shalt.err (!%p699_p10)
}
 0x24f   :  { %s703_s6 = scalar_lea.hbm %s913_s5, 256 }
 0x250   :  { %p704_p11 = scmp.ne.s32.totalorder %s913_s5, %s703_s6  ;;  %p707_p12 = scmp.lt.u32.totalorder %s703_s6, %s913_s5 }
 0x252   :  { %p709_p13 = pnand %p707_p12, %p704_p11 }
 0x254   :  { %712 = shalt.err (!%p709_p13)
}
 0x255   :  { %416 = dma.vmem_to_hbm [thread:$0]  %s411_s26, 256, %s913_s5, [#allocation4], %s725_s9, %s725_s9, %s726_s10  }
 0x256   :  { %719 = dma.done.wait [#allocation4], 256  }
 0x257   :  { %720 = vsyncadd [#allocation4], 4294967040 }
 0x258   :  { %721 = dma.done.wait [#allocation13], 16  }
 0x259   :  { %722 = vsyncadd [#allocation13], 4294967280 }
 0x25a   :  { %433 = vsyncpa [#allocation3], 1 }
 0x25b   :  { %434 = vsyncpa [#allocation6], 1 }
 0x25c   :  { %435 = vsyncpa [#allocation9], 1 }
 0x25d   :  { %436 = vsyncpa [#allocation4], 1 }
 0x25e   :  { %437 = vsyncpa [#allocation13], 1 }

</bundles_post_ra>
